<compile_context>
chip_gen: v7x
topology: tpu7x:2x2x1
jax: 0.10.0
libtpu: 0.0.40
codegen_flags: <defaults>
</compile_context>

<pallas_src>
import functools

import numpy as np
import jax
import jax.numpy as jnp
from jax import lax
from jax.experimental import pallas as pl
from jax.experimental.pallas import tpu as pltpu

_EPS_SQ = 1e-24                          # mirrors torch's  x / (||x|| + 1e-12)
_NT_DIMS = (((1,), (1,)), ((), ()))      # contract last dims: A @ B^T on MXU


# --------------------------------------------------------------------------
# Dense path
# --------------------------------------------------------------------------
def _dense_kernel(max_iter, u0_ref, m_ref, sigma_ref, uout_ref):
    # u0_ref : (1, n_in)   m_ref : (n_out, n_in)
    # uout_ref doubles as the iteration carry buffer (no extra scratch).
    uout_ref[...] = u0_ref[...]

    @pl.loop(0, max_iter)
    def _(_it):
        u = uout_ref[...]                               # (1, n_in)
        m = m_ref[...]                                  # (n_out, n_in)
        # v = normalize(M @ u)   (row form u @ M^T; transpose done by the MXU)
        vr = lax.dot_general(u, m, _NT_DIMS,
                             preferred_element_type=jnp.float32)
        v = vr * lax.rsqrt(jnp.sum(vr * vr) + _EPS_SQ)  # EUP rsqrt, no divide
        # u = normalize(M^T @ v) (row form v @ M)
        un = jnp.dot(v, m, preferred_element_type=jnp.float32)
        ss = jnp.sum(un * un)
        inv = lax.rsqrt(ss + _EPS_SQ)
        uout_ref[...] = un * inv
        # sigma = sum((M u_new) * v) == ||M^T v|| == ss * rsqrt(ss)
        sigma_ref[0] = ss * inv


def _maybe_compiler_params(vmem_bytes_est):
    # Tiny problems (like the test) keep the default scoped-VMEM limit; only
    # raise it when the grid-less kernel actually needs more.
    # TODO(synk): for M / feature maps approaching VMEM size, switch to a
    # blocked grid (emit_pipeline over row/col tiles) + 2-TC sharding instead
    # of raising the limit (v7x only has 64 MiB physical VMEM).
    if vmem_bytes_est <= 32 * 1024 * 1024:
        return None
    return pltpu.CompilerParams(
        vmem_limit_bytes=int(min(vmem_bytes_est + (4 << 20),
                                 96 * 1024 * 1024)))


def spectral_norm_dense(M, u, max_iter):
    """M: (n_out, n_in) f32, u: (n_in,) f32 -> (sigma, new_u)."""
    assert max_iter >= 1, "power method needs at least one iteration"
    n_out, n_in = M.shape
    u2 = u.reshape(1, n_in).astype(jnp.float32)
    M = M.astype(jnp.float32)
    kern = functools.partial(_dense_kernel, max_iter)
    est = 4 * (M.size + 8 * (n_in + n_out))
    sigma, u_new = pl.pallas_call(
        kern,
        out_shape=(jax.ShapeDtypeStruct((1,), jnp.float32),
                   jax.ShapeDtypeStruct((1, n_in), jnp.float32)),
        in_specs=[pl.BlockSpec(memory_space=pltpu.VMEM),
                  pl.BlockSpec(memory_space=pltpu.VMEM)],
        out_specs=(pl.BlockSpec(memory_space=pltpu.SMEM),
                   pl.BlockSpec(memory_space=pltpu.VMEM)),
        compiler_params=_maybe_compiler_params(est),
    )(u2, M)
    return sigma[0], u_new.reshape(n_in)


# --------------------------------------------------------------------------
# Conv path  (3x3 "same" conv + adjoint as 9 roll+mask+matmul accumulations)
# --------------------------------------------------------------------------
def _conv_kernel(max_iter, c_out, c_in, H, W,
                 u0_ref, wf_ref, wa_ref, mask_ref, sigma_ref, uout_ref):
    # u0_ref  : (c_in, H*W)          lane-dense flattened feature map
    # wf_ref  : (9, c_out, c_in)     forward taps   K[:, :, dy, dx]
    # wa_ref  : (9, c_in, c_out)     adjoint taps   K[:, :, 1-sy, 1-sx]^T
    # mask_ref: (9, 1, H*W)          1.0 where the shifted read is in-bounds
    HW = H * W
    offs = [(sy, sx) for sy in (-1, 0, 1) for sx in (-1, 0, 1)]

    def shift(x, k, sy, sx):
        # x[:, i, j] -> x[:, i+sy, j+sx] with zero fill, on the flat (c, HW)
        # layout: one XLU lane-roll plus a precomputed validity mask.
        if sy == 0 and sx == 0:
            return x
        r = pltpu.roll(x, shift=(-(sy * W + sx)) % HW, axis=1)
        return r * mask_ref[k]                       # (c, HW) * (1, HW)

    def conv_fwd(u):                                 # (c_in, HW) -> (c_out, HW)
        acc = None
        for k, (sy, sx) in enumerate(offs):
            t = jnp.dot(wf_ref[k], shift(u, k, sy, sx),
                        preferred_element_type=jnp.float32)
            acc = t if acc is None else acc + t
        return acc

    def conv_adj(v):                                 # (c_out, HW) -> (c_in, HW)
        acc = None
        for k, (sy, sx) in enumerate(offs):
            t = jnp.dot(wa_ref[k], shift(v, k, sy, sx),
                        preferred_element_type=jnp.float32)
            acc = t if acc is None else acc + t
        return acc

    uout_ref[...] = u0_ref[...]

    @pl.loop(0, max_iter)
    def _(_it):
        u = uout_ref[...]
        # v = normalize(conv2d(pad(u), K))
        vr = conv_fwd(u)
        v = vr * lax.rsqrt(jnp.sum(vr * vr) + _EPS_SQ)
        # u = normalize(crop(conv_transpose2d(v, K)))   (adjoint of same-conv)
        un = conv_adj(v)
        ss = jnp.sum(un * un)
        inv = lax.rsqrt(ss + _EPS_SQ)
        uout_ref[...] = un * inv
        # sigma = sum(conv2d(pad(u_new), K) * v) == ||adjoint(v)||
        sigma_ref[0] = ss * inv


def _make_shift_masks(H, W):
    """(9, 1, H*W) f32 mask: 1 where the (sy, sx)-shifted read is in-bounds."""
    HW = H * W
    m = np.zeros((9, 1, HW), np.float32)
    k = 0
    for sy in (-1, 0, 1):
        for sx in (-1, 0, 1):
            valid = np.zeros((H, W), np.float32)
            valid[max(0, -sy):min(H, H - sy), max(0, -sx):min(W, W - sx)] = 1.0
            m[k, 0] = valid.reshape(HW)
            k += 1
    return jnp.asarray(m)


def spectral_norm_conv(kernel4d, u, max_iter):
    """kernel4d: (C_out, C_in, 3, 3) f32, u: (1, C_in, H, W) f32."""
    assert max_iter >= 1, "power method needs at least one iteration"
    c_out, c_in, kh, kw = kernel4d.shape
    assert (kh, kw) == (3, 3), "module's conv path assumes a 3x3 kernel"
    _, _, H, W = u.shape
    HW = H * W
    u2 = u.reshape(c_in, HW).astype(jnp.float32)
    K = kernel4d.astype(jnp.float32)
    # w_fwd[k] = K[:, :, k//3, k%3]       forward tap (dy, dx) = (sy+1, sx+1)
    # w_adj[k] = K[:, :, 1-sy, 1-sx]^T    spatially flipped + channel-transposed
    w_fwd = jnp.transpose(K, (2, 3, 0, 1)).reshape(9, c_out, c_in)
    w_adj = jnp.transpose(w_fwd[::-1], (0, 2, 1))
    masks = _make_shift_masks(H, W)
    kern = functools.partial(_conv_kernel, max_iter, c_out, c_in, H, W)
    est = 4 * (4 * (c_in + c_out) * HW + 2 * 9 * c_in * c_out + 9 * HW)
    sigma, u_new = pl.pallas_call(
        kern,
        out_shape=(jax.ShapeDtypeStruct((1,), jnp.float32),
                   jax.ShapeDtypeStruct((c_in, HW), jnp.float32)),
        in_specs=[pl.BlockSpec(memory_space=pltpu.VMEM)] * 4,
        out_specs=(pl.BlockSpec(memory_space=pltpu.SMEM),
                   pl.BlockSpec(memory_space=pltpu.VMEM)),
        compiler_params=_maybe_compiler_params(est),
    )(u2, w_fwd, w_adj, masks)
    return sigma[0], u_new.reshape(1, c_in, H, W)


# --------------------------------------------------------------------------
# Module-like wrapper (mirrors SpectralNormPowerMethod)
# --------------------------------------------------------------------------
class SpectralNormPowerMethod:
    def __init__(self, input_size, key, eps=1e-8):
        self.input_size = input_size
        # eps is stored for API parity; like the torch module, normalize()
        # uses a fixed tiny guard rather than self.eps.
        self.eps = eps
        shape = input_size if isinstance(input_size, tuple) else (input_size,)
        u = jax.random.normal(key, shape, jnp.float32)
        self.u = u / jnp.linalg.norm(u)

    def __call__(self, M, max_iter):
        if M.ndim == 4:
            sigma, self.u = spectral_norm_conv(M, self.u, max_iter)
            return sigma
        elif M.ndim == 2:
            sigma, self.u = spectral_norm_dense(M, self.u, max_iter)
            return sigma
        raise ValueError("Input tensor must be 2D (dense) or 4D (conv).")


# --------------------------------------------------------------------------
# Pure-JAX references (sanity check only)
# --------------------------------------------------------------------------
def _normalize_ref(x):
    return x / (jnp.sqrt(jnp.sum(x * x)) + 1e-12)


def _ref_dense(M, u0, max_iter):
    u = u0
    v = None
    for _ in range(max_iter):
        v = _normalize_ref(M @ u)
        u = _normalize_ref(M.T @ v)
    return jnp.sum((M @ u) * v)


def _ref_conv_same(x, K):
    return lax.conv_general_dilated(x, K, (1, 1), ((1, 1), (1, 1)),
                                    dimension_numbers=("NCHW", "OIHW", "NCHW"))


def _ref_conv_adj(y, K):
    Kf = jnp.flip(K, axis=(2, 3)).transpose(1, 0, 2, 3)
    return lax.conv_general_dilated(y, Kf, (1, 1), ((1, 1), (1, 1)),
                                    dimension_numbers=("NCHW", "OIHW", "NCHW"))


def _ref_conv(K, u0, max_iter):
    u = u0
    v = None
    for _ in range(max_iter):
        v = _normalize_ref(_ref_conv_same(u, K))
        u = _normalize_ref(_ref_conv_adj(v, K))
    return jnp.sum(_ref_conv_same(u, K) * v)


if __name__ == "__main__":
    key = jax.random.PRNGKey(0)
    k_m, k_u1, k_k, k_u2 = jax.random.split(key, 4)
    max_iter = 10

    # --- dense path: M (32, 32), u (32,) ---
    n_out, n_in = 32, 32
    M = jax.random.normal(k_m, (n_out, n_in), jnp.float32)
    snm_dense = SpectralNormPowerMethod(n_in, key=k_u1)
    u0_dense = snm_dense.u
    sigma_dense = snm_dense(M, max_iter)
    jax.block_until_ready(sigma_dense)

    # --- conv path: kernel (4, 4, 3, 3), u (1, 4, 16, 16) ---
    c_out, c_in, H, W = 4, 4, 16, 16
    K = jax.random.normal(k_k, (c_out, c_in, 3, 3), jnp.float32)
    snm_conv = SpectralNormPowerMethod((1, c_in, H, W), key=k_u2)
    u0_conv = snm_conv.u
    sigma_conv = snm_conv(K, max_iter)
    jax.block_until_ready(sigma_conv)

    # sanity check against plain-JAX references
    ref_d = _ref_dense(M, u0_dense, max_iter)
    ref_c = _ref_conv(K, u0_conv, max_iter)
    assert abs(float(sigma_dense) - float(ref_d)) <= 1e-2 * abs(float(ref_d)) + 1e-3
    assert abs(float(sigma_conv) - float(ref_c)) <= 1e-2 * abs(float(ref_c)) + 1e-3

    print("KERNEL_OK")
</pallas_src>

<mosaic_0001>
module attributes {stable_mosaic.version = 11 : i64} {
  func.func @_dense_kernel(%arg0: memref<1x32xf32, #tpu.memory_space<vmem>>, %arg1: memref<32x32xf32, #tpu.memory_space<vmem>>, %arg2: memref<1xf32, #tpu.memory_space<smem>>, %arg3: memref<1x32xf32, #tpu.memory_space<vmem>>) attributes {dimension_semantics = [], scalar_prefetch = 0 : i64, scratch_operands = 0 : i64, tpu.core_type = #tpu.core_type<tc>} {
    %c0 = arith.constant 0 : index
    %c0_0 = arith.constant 0 : index
    %0 = vector.load %arg0[%c0, %c0_0] : memref<1x32xf32, #tpu.memory_space<vmem>>, vector<1x32xf32>
    %c0_1 = arith.constant 0 : index
    %c0_2 = arith.constant 0 : index
    %1 = vector.load %arg3[%c0_1, %c0_2] : memref<1x32xf32, #tpu.memory_space<vmem>>, vector<1x32xf32>
    tpu.vector_store %arg3[%c0_1, %c0_2], %0 {strides = array<i32>} : memref<1x32xf32, #tpu.memory_space<vmem>>, vector<1x32xf32>,
    %c0_i32 = arith.constant 0 : i32
    %c10_i32 = arith.constant 10 : i32
    %2 = arith.addi %c0_i32, %c10_i32 : i32
    %c1_i32 = arith.constant 1 : i32
    scf.for %arg4 = %c0_i32 to %2 step %c1_i32  : i32 {
      %c0_3 = arith.constant 0 : index
      %c0_4 = arith.constant 0 : index
      %3 = vector.load %arg3[%c0_3, %c0_4] : memref<1x32xf32, #tpu.memory_space<vmem>>, vector<1x32xf32>
      %c0_5 = arith.constant 0 : index
      %c0_6 = arith.constant 0 : index
      %4 = vector.load %arg1[%c0_5, %c0_6] : memref<32x32xf32, #tpu.memory_space<vmem>>, vector<32x32xf32>
      %cst = arith.constant dense<0.000000e+00> : vector<1x32xf32>
      %5 = tpu.matmul %3, %4, %cst {dimension_numbers = #tpu.dot_dimension_numbers<[1], [1], [0], [0], [0, 0, 1, 0], [], []>} : vector<1x32xf32>, vector<32x32xf32>, vector<1x32xf32> -> vector<1x32xf32>
      %6 = arith.mulf %5, %5 : vector<1x32xf32>
      %7 = vector.shape_cast %6 : vector<1x32xf32> to vector<1x1x32xf32>
      %cst_7 = arith.constant dense<0.000000e+00> : vector<1xf32>
      %8 = vector.multi_reduction <add>, %7, %cst_7 [1, 2] : vector<1x1x32xf32> to vector<1xf32>
      %9 = vector.shape_cast %8 : vector<1xf32> to vector<1x1x1xf32>
      %10 = vector.extract %9[0, 0, 0] : f32 from vector<1x1x1xf32>
      %cst_8 = arith.constant 1.000000e-24 : f32
      %11 = arith.addf %10, %cst_8 : f32
      %12 = math.rsqrt %11 : f32
      %13 = vector.broadcast %12 : f32 to vector<1x32xf32>
      %14 = arith.mulf %5, %13 : vector<1x32xf32>
      %cst_9 = arith.constant dense<0.000000e+00> : vector<1x32xf32>
      %15 = tpu.matmul %14, %4, %cst_9 {dimension_numbers = #tpu.dot_dimension_numbers<[1], [0], [0], [1], [0, 0, 1, 1], [], []>} : vector<1x32xf32>, vector<32x32xf32>, vector<1x32xf32> -> vector<1x32xf32>
      %16 = arith.mulf %15, %15 : vector<1x32xf32>
      %17 = vector.shape_cast %16 : vector<1x32xf32> to vector<1x1x32xf32>
      %cst_10 = arith.constant dense<0.000000e+00> : vector<1xf32>
      %18 = vector.multi_reduction <add>, %17, %cst_10 [1, 2] : vector<1x1x32xf32> to vector<1xf32>
      %19 = vector.shape_cast %18 : vector<1xf32> to vector<1x1x1xf32>
      %20 = vector.extract %19[0, 0, 0] : f32 from vector<1x1x1xf32>
      %cst_11 = arith.constant 1.000000e-24 : f32
      %21 = arith.addf %20, %cst_11 : f32
      %22 = math.rsqrt %21 : f32
      %23 = vector.broadcast %22 : f32 to vector<1x32xf32>
      %24 = arith.mulf %15, %23 : vector<1x32xf32>
      %c0_12 = arith.constant 0 : index
      %c0_13 = arith.constant 0 : index
      %25 = vector.load %arg3[%c0_12, %c0_13] : memref<1x32xf32, #tpu.memory_space<vmem>>, vector<1x32xf32>
      tpu.vector_store %arg3[%c0_12, %c0_13], %24 {strides = array<i32>} : memref<1x32xf32, #tpu.memory_space<vmem>>, vector<1x32xf32>,
      %26 = arith.mulf %20, %22 : f32
      %c0_14 = arith.constant 0 : index
      %27 = memref.load %arg2[%c0_14] : memref<1xf32, #tpu.memory_space<smem>>
      memref.store %26, %arg2[%c0_14] : memref<1xf32, #tpu.memory_space<smem>>
    }
    return
  }
}

</mosaic_0001>

<bundles_post_ra>
// kernel: tpu_custom_call.1
= control target key start
LH: loop header
LB: loop body
LE: loop exit
PB: predicated region body
PF: predicated region fallthrough
CT: control target
= control target key end

     0   :  { %9 = vsyncpa [#allocation3], 0  ;;  %s559_s0 = inlined_call_operand.hbm [shape: f32[1,32], index: 0, kind: input, shape index: {}]   ;;  %s560_s1 = inlined_call_operand.hbm [shape: f32[32,32], index: 1, kind: input, shape index: {}]   ;;  %s561_s2 = inlined_call_operand.hbm [shape: f32[1], index: 2, kind: output, shape index: {0}]   ;;  %s562_s3 = inlined_call_operand.hbm [shape: f32[1,32], index: 3, kind: output, shape index: {1}]  }
   0x1   :  { %10 = vsyncpa [#allocation7], 0 }
   0x2   :  { %11 = vsyncpa [#allocation5], 0 }
   0x3   :  { %12 = vsyncpa [#allocation4], 0  ;;  %s459_s12 = smov [#allocation2]   ;;  %s460_s14 = smov [#allocation6]  }
   0x4   :  { %s19_s13 = sshll.u32 %s459_s12, 4  ;;  %s28_s15 = sshll.u32 %s460_s14, 4  ;;  %s20_s13 = int_to_ptr.vmem [resolvable:$true] %s19_s13  ;;  %s488_s15 = int_to_ptr.vmem [resolvable:$true] %s28_s15 }
   0x5   :  { %s367_s18 = scalar_lea.hbm %s559_s0, 16 }
   0x6   :  { %p368_p0 = scmp.ne.s32.totalorder %s559_s0, %s367_s18  ;;  %p371_p1 = scmp.lt.u32.totalorder %s367_s18, %s559_s0 }
   0x8   :  { %p373_p2 = pnand %p371_p1, %p368_p0 }
   0xa   :  { %376 = shalt.err (!%p373_p2)
}
   0xb   :  { %s377_s23 = scalar_lea.vmem %s20_s13, 16  ;;  %s381_s24 = scalar_lea.vmem %s20_s13, 32 }
   0xc   :  { %p378_p3 = scmp.ne.s32.totalorder %s20_s13, %s377_s23  ;;  %p382_p4 = scmp.lt.s32.totalorder %s20_s13, %s20_s13 }
   0xd   :  { %p383_p5 = scmp.lt.s32.totalorder %s381_s24, %s377_s23 }
   0xf   :  { %p384_p6 = por %p383_p5, %p382_p4 }
  0x11   :  { %p385_p7 = pnand %p384_p6, %p378_p3 }
  0x13   :  { %388 = shalt.err (!%p385_p7)
}
  0x14   :  { %22 = dma.hbm_to_vmem [thread:$0]  %s559_s0, 16, %s20_s13, [#allocation3]  }
  0x15   :  { %s389_s29 = scalar_lea.hbm %s560_s1, 512 }
  0x16   :  { %p390_p8 = scmp.ne.s32.totalorder %s560_s1, %s389_s29  ;;  %p393_p9 = scmp.lt.u32.totalorder %s389_s29, %s560_s1 }
  0x18   :  { %p395_p10 = pnand %p393_p9, %p390_p8 }
  0x1a   :  { %398 = shalt.err (!%p395_p10)
}
  0x1b   :  { %s399_s7 = scalar_lea.vmem %s488_s15, 512  ;;  %p404_p12 = scmp.lt.s32.totalorder %s488_s15, %s488_s15 }
  0x1c   :  { %p400_p11 = scmp.ne.s32.totalorder %s488_s15, %s399_s7  ;;  %p405_p13 = scmp.lt.s32.totalorder %s399_s7, %s399_s7 }
  0x1e   :  { %p406_p0 = por %p405_p13, %p404_p12 }
  0x20   :  { %p407_p1 = pnand %p406_p0, %p400_p11 }
  0x22   :  { %410 = shalt.err (!%p407_p1)
}
  0x23   :  { %s461_s0 = smov 128   ;;  %s462_s8 = smov 8  }
  0x24   :  { %34 = dma.hbm_to_vmem [thread:$0]  %s560_s1, 512, %s488_s15, [#allocation7], %s461_s0, %s461_s0, %s462_s8  }
  0x25   :  { %447 = dma.done.wait [#allocation3], 16  }
  0x26   :  { %448 = vsyncadd [#allocation3], 4294967280 }
  0x27   :  { %449 = dma.done.wait [#allocation7], 512  }
  0x28   :  { %450 = vsyncadd [#allocation7], 4294966784  ;;  %vm42_vm0 = vcmask 253952   ;;  %v41_v0 = vld [vmem:[#allocation2] sm:$0x1]  ;;  %s520_s11 = smov 0  }
  0x29   :  { %43 = vst.msk [vmem:[#allocation9] sm:$0x1] %vm42_vm0, %v41_v0 }
  0x2a LB: > { %v51_v1 = vld [vmem:[#allocation6] sm:$0xff]  ;;  %v52_v2 = vld [vmem:[#allocation6 + $0x8] sm:$0xff]  ;;  %vm55_vm1 = vcmask 261120   ;;  %v463_v3 = vmov 0.0|0.0   ;;  %v53_v5 = vld [vmem:[#allocation6 + $0x10] sm:$0xff]  ;;  %vm464_vm3 = vmmov 0   ;;  %s457_s11 = sphi %s520_s11, %s49_s11  }
  0x2b   : > { %324 = vmatprep.subr.bf16.mxu0 %v463_v3  ;;  %v325_v4 = vpack.c.bf16 %v52_v2, %v51_v1  ;;  %vm326_vm2 = vmpackc.low %vm55_vm1, %vm55_vm1  ;;  %332 = vmatprep.subr.bf16.mxu1 %v463_v3  ;;  %v54_v6 = vld [vmem:[#allocation6 + $0x18] sm:$0xff]  ;;  %v465_v7 = vmov 0.0   ;;  %s49_s11 = sadd.s32 1, %s457_s11  }
  0x2c   : > { %310 = vmatprep.mubr.msk.f32.mxu0 %vm464_vm3, %v465_v7  ;;  %321 = vmatprep.mubr.msk.f32.mxu1 %vm464_vm3, %v465_v7  ;;  %v329_v8 = vpack.c.bf16 %v54_v6, %v53_v5  ;;  %p46_p2 = scmp.ge.s32.totalorder %s49_s11, 10  }
  0x2d   : > { %327 = vmatpush3.bf16.xpose.msk.msra.mxu0 %vm326_vm2, %v325_v4  ;;  %334 = vmatpush3.bf16.msra.mxu1 %v325_v4  ;;  %s411_s20 = scalar_lea.hbm (%p46_p2), %s561_s2, 16 }
  0x2e   : > { %328 = vmatprep.subr.bf16.mxu0 %v463_v3  ;;  %335 = vmatprep.subr.bf16.mxu1 %v463_v3  ;;  %p412_p3 = scmp.ne.s32.totalorder (%p46_p2), %s561_s2, %s411_s20  ;;  %p415_p4 = scmp.lt.u32.totalorder (%p46_p2), %s411_s20, %s561_s2 }
  0x30   : > { %v50_v9 = vld [vmem:[#allocation9] sm:$0x1]  ;;  %p417_p5 = pnand (%p46_p2), %p415_p4, %p412_p3 }
  0x31   : > { %337 = vmatpush3.bf16.msra.mxu1 %v329_v8 }
  0x35   : > { %331 = vmatpush3.bf16.xpose.msk.msra.mxu0 %vm326_vm2, %v329_v8 }
  0x3c   : > { %311 = vmatmul.mubr.msk.f32.vlgmr.msra.gmra.mrb[0].mxu0 %vm55_vm1, %v50_v9 }
 0x10f   : > { %v137_v10 = vpop.f32.mrb[0].mxu0 }
 0x110   : > { %v312_v11 = vpop.f32.mrb[1].mxu0  ;;  %v141_v12 = vmul.f32 %v137_v10, %v137_v10 }
 0x112   : > { %v142_v13 = vsel %vm42_vm0, %v141_v12, 0.0 }
 0x113   : > { %143 = vadd.xlane.f32.xlu0 %v142_v13 }
 0x1a0   : > { %v144_v14 = vpop.xlane.xlu0 %143 }
 0x1a1   : > { %v145_v15 = vrot.slane %v144_v14, 4 }
 0x1a3   : > { %v146_v16 = vadd.f32 %v145_v15, %v144_v14 }
 0x1a5   : > { %v147_v17 = vrot.slane %v146_v16, 2 }
 0x1a7   : > { %v148_v18 = vadd.f32 %v147_v17, %v146_v16 }
 0x1a9   : > { %v149_v19 = vrot.slane %v148_v18, 1 }
 0x1ab   : > { %v150_v20 = vadd.f32 %v149_v19, %v148_v18 }
 0x1ad   : > { %338 = vpush %v150_v20 }
 0x1de   : > { %s339_s1 = spop %338 }
 0x1df   : > { %s152_s12 = sadd.f32 1e-24, %s339_s1 }
 0x1e1   : > { %v153_v21 = vstv %s152_s12 }
 0x1e2   : > { %363 = vrsqrt.f32 %v153_v21 }
 0x1ec   : > { %v364_v22 = vpop.eup %363 }
 0x1ed   : > { %340 = vpush %v364_v22 }
 0x21e   : > { %s341_s13 = spop %340 }
 0x21f   : > { %v156_v23 = vstv %s341_s13 }
 0x220   : > { %v157_v24 = vmul.f32 %v156_v23, %v137_v10 }
 0x222   : > { %322 = vmatmul.mubr.msk.f32.vlgmr.msra.gmra.mrb[0].mxu1 %vm55_vm1, %v157_v24 }
 0x2f5   : > { %v227_v25 = vpop.f32.mrb[0].mxu1 }
 0x2f6   : > { %v323_v26 = vpop.f32.mrb[1].mxu1  ;;  %v231_v27 = vmul.f32 %v227_v25, %v227_v25 }
 0x2f8   : > { %v232_v28 = vsel %vm42_vm0, %v231_v27, 0.0 }
 0x2f9   : > { %233 = vadd.xlane.f32.xlu0 %v232_v28 }
 0x386   : > { %v234_v29 = vpop.xlane.xlu0 %233 }
 0x387   : > { %v235_v30 = vrot.slane %v234_v29, 4 }
 0x389   : > { %v236_v31 = vadd.f32 %v235_v30, %v234_v29 }
 0x38b   : > { %v237_v32 = vrot.slane %v236_v31, 2 }
 0x38d   : > { %v238_v33 = vadd.f32 %v237_v32, %v236_v31 }
 0x38f   : > { %v239_v34 = vrot.slane %v238_v33, 1 }
 0x391   : > { %v240_v35 = vadd.f32 %v239_v34, %v238_v33 }
 0x393   : > { %342 = vpush %v240_v35 }
 0x3c4   : > { %s343_s14 = spop %342 }
 0x3c5   : > { %s242_s15 = sadd.f32 1e-24, %s343_s14 }
 0x3c7   : > { %v243_v36 = vstv %s242_s15 }
 0x3c8   : > { %365 = vrsqrt.f32 %v243_v36 }
 0x3d2   : > { %v366_v37 = vpop.eup %365 }
 0x3d3   : > { %344 = vpush %v366_v37 }
 0x402   :  { %48 = sbr.rel (!%p46_p2) target bundleno = 42 (0x2a), region = 52 }
 0x404   : > { %s345_s16 = spop %344 }
 0x405   : > { %v246_v38 = vstv %s345_s16  ;;  %s249_s17 = smul.f32 %s345_s16, %s343_s14 }
 0x406   : > { %v247_v39 = vmul.f32 %v246_v38, %v227_v25 }
 0x407   : > { %251 = sst [smem:[#allocation8]] %s249_s17 }
 0x408   : > { %248 = vst.msk [vmem:[#allocation9] sm:$0x1] %vm42_vm0, %v247_v39 }
 0x409   :  { %420 = shalt.err (!%p417_p5)
}
 0x40a   :  { %s466_s25 = smov [#allocation8]   ;;  %s467_s28 = smov [#allocation9]  }
 0x40b   :  { %259 = dma.smem_to_hbm %s466_s25, 16, %s561_s2, [#allocation5]  }
 0x40c   :  { %s266_s29 = sshll.u32 %s467_s28, 4  ;;  %s267_s29 = int_to_ptr.vmem [resolvable:$true] %s266_s29 }
 0x40d   :  { %s421_s30 = scalar_lea.vmem %s267_s29, 16  ;;  %s425_s4 = scalar_lea.vmem %s267_s29, 32 }
 0x40e   :  { %p422_p6 = scmp.ne.s32.totalorder %s267_s29, %s421_s30  ;;  %p426_p7 = scmp.lt.s32.totalorder %s267_s29, %s267_s29 }
 0x40f   :  { %p427_p8 = scmp.lt.s32.totalorder %s425_s4, %s421_s30 }
 0x411   :  { %p428_p9 = por %p427_p8, %p426_p7 }
 0x413   :  { %p429_p10 = pnand %p428_p9, %p422_p6 }
 0x415   :  { %432 = shalt.err (!%p429_p10)
}
 0x416   :  { %s433_s7 = scalar_lea.hbm %s562_s3, 16 }
 0x417   :  { %p434_p11 = scmp.ne.s32.totalorder %s562_s3, %s433_s7  ;;  %p437_p12 = scmp.lt.u32.totalorder %s433_s7, %s562_s3 }
 0x419   :  { %p439_p13 = pnand %p437_p12, %p434_p11 }
 0x41b   :  { %442 = shalt.err (!%p439_p13)
}
 0x41c   :  { %269 = dma.vmem_to_hbm [thread:$0]  %s267_s29, 16, %s562_s3, [#allocation4]  }
 0x41d   :  { %451 = dma.done.wait [#allocation5], 16  }
 0x41e   :  { %452 = vsyncadd [#allocation5], 4294967280 }
 0x41f   :  { %453 = dma.done.wait [#allocation4], 16  }
 0x420   :  { %454 = vsyncadd [#allocation4], 4294967280 }
 0x421   :  { %276 = sfence }
 0x422   :  { %277 = vsyncpa [#allocation3], 1 }
 0x423   :  { %278 = vsyncpa [#allocation7], 1 }
 0x424   :  { %279 = vsyncpa [#allocation4], 1 }
 0x425   :  { %280 = vsyncpa [#allocation5], 1 }

</bundles_post_ra>
